<compile_context>
chip_gen: v5e
topology: v5e:2x2
jax: 0.10.0
libtpu: 0.0.40
codegen_flags: <defaults>
</compile_context>

<pallas_src>
import jax
import jax.numpy as jnp
from jax.experimental import pallas as pl
from jax.experimental.pallas import tpu as pltpu


def _kmeans_kernel(x_ref, c_ref, b_ref, out_ref):
    # x_ref: (TN, D) feature tile, c_ref: (K, D) centers, b_ref: (K, 1) f32
    # bias (-0.5*||c||^2), out_ref: (TN//128, 128) int32 cluster indices.
    # scores^T = C @ X^T -> (K, TN); f32 accumulation on the MXU; operands stay
    # in their native dtype (memory-bound kernel, MXU utilization is irrelevant
    # until K reaches several hundred).
    scores = jax.lax.dot_general(
        c_ref[...], x_ref[...], (((1,), (1,)), ((), ())),
        preferred_element_type=jnp.float32)
    scores = scores + b_ref[...]                       # (K, 1) bias over lanes

    k = scores.shape[0]
    nbits = max(1, (k - 1).bit_length())               # static index bit count
    mask = (1 << nbits) - 1

    # Bit-packed single-reduce argmax:
    #   key    = order-preserving int32 view of the f32 score
    #   packed = key with its low `nbits` bits replaced by (K-1-k)
    # One jnp.max over the K (sublane) axis then yields both the max score and,
    # in its low bits, the smallest k attaining it (first-occurrence tie-break,
    # up to a 2^-(23-nbits) relative tie window on the score).
    bits = pltpu.bitcast(scores, jnp.int32)
    key = bits ^ ((bits >> 31) & jnp.int32(0x7FFFFFFF))            # monotone map
    rev = (k - 1) - jax.lax.broadcasted_iota(jnp.int32, (k, 1), 0)  # (K, 1)
    packed = (key & jnp.int32(~mask)) | rev

    best = jnp.max(packed, axis=0, keepdims=True)      # (1, TN): single XLU reduce
    idx = (k - 1) - (best & jnp.int32(mask))           # (1, TN) int32 indices

    rows = out_ref.shape[0]                            # static == TN // 128
    out_ref[...] = idx.reshape(rows, 128)              # one dense full-block store


def _round_up(x: int, m: int) -> int:
    return ((x + m - 1) // m) * m


def _vmem_budget_bytes() -> int:
    cap = 64 << 20                       # conservative default (v7x per-TC VMEM)
    try:
        info = pltpu.get_tpu_info()
        cap = int(getattr(info, "vmem_capacity_bytes", cap) or cap)
    except Exception:
        pass
    return min(cap * 3 // 4, 96 << 20)   # ~48 MiB on v7x, <= 96 MiB on v5e/v6e


def _est_vmem_bytes(tile_n: int, d_pad: int, k_pad: int, itemsize: int) -> int:
    feat = 2 * tile_n * d_pad * itemsize      # double-buffered feature tiles
    cent = 2 * k_pad * d_pad * itemsize       # centers (constant index_map)
    bias = 2 * k_pad * 128 * 4                # bias block, lane-padded
    outb = 2 * tile_n * 4                     # double-buffered output blocks
    epi = 3 * k_pad * tile_n * 4              # scores / key / packed working set
    return feat + cent + bias + outb + epi


def _pick_tile_n(n: int, d_pad: int, k_pad: int, itemsize: int, budget: int) -> int:
    # ~4 MiB of feature bytes per grid step; multiples of 1024 rows keep the
    # (TN//128, 128) output block sublane-aligned for multi-step grids.
    tile_n = max(1024, ((4 << 20) // (d_pad * itemsize)) // 1024 * 1024)
    while tile_n > 1024 and _est_vmem_bytes(tile_n, d_pad, k_pad, itemsize) > budget:
        tile_n -= 1024
    # TODO(synk): for very large D (or K) where even tile_n=1024 blows the
    # budget, add an "arbitrary" D-chunk grid axis with a (K, tile_n) VMEM
    # accumulator instead of shrinking tile_n further.
    if n > 1024:
        # keep >= 2 grid steps so both v7x TensorCores get work
        tile_n = min(tile_n, _round_up((n + 1) // 2, 1024))
    else:
        tile_n = min(tile_n, _round_up(max(n, 1), 128))
    return tile_n


def kmeans_predict(features: jax.Array, cluster_centers: jax.Array) -> jax.Array:
    """features: (N, D), cluster_centers: (K, D) -> (N,) int32 cluster indices."""
    assert features.ndim == 2, f"Expected 2D tensor during inference, got {features.ndim}"
    n, d = features.shape
    k, d2 = cluster_centers.shape
    assert d == d2, "feature dim mismatch"

    d_pad = _round_up(d, 128)
    k_pad = _round_up(max(k, 8), 8)
    itemsize = jnp.dtype(features.dtype).itemsize
    budget = _vmem_budget_bytes()
    tile_n = _pick_tile_n(n, d_pad, k_pad, itemsize, budget)
    num_tiles = -(-n // tile_n)
    rows = tile_n // 128

    # Fold the center norms into a (K, 1) f32 bias once, outside the grid loop.
    centers_f32 = cluster_centers.astype(jnp.float32)
    bias = -0.5 * jnp.sum(centers_f32 * centers_f32, axis=-1, keepdims=True)
    centers = cluster_centers.astype(features.dtype)   # matching MXU operand dtypes

    out = pl.pallas_call(
        _kmeans_kernel,
        out_shape=jax.ShapeDtypeStruct((num_tiles * rows, 128), jnp.int32),
        grid_spec=pltpu.PrefetchScalarGridSpec(
            num_scalar_prefetch=0,
            grid=(num_tiles,),
            in_specs=[
                # Ragged N: the last feature block may be partial; Pallas masks
                # the DMA (no OOB HBM read) and the garbage tail indices are
                # sliced off below — no full-copy jnp.pad of the features.
                pl.BlockSpec((tile_n, d), lambda i: (i, 0)),
                pl.BlockSpec((k, d), lambda i: (0, 0)),      # centers, resident
                pl.BlockSpec((k, 1), lambda i: (0, 0)),      # center-norm bias
            ],
            out_specs=pl.BlockSpec((rows, 128), lambda i: (i, 0)),
        ),
        compiler_params=pltpu.CompilerParams(
            dimension_semantics=("parallel",),     # shard grid across TCs (v7x)
            vmem_limit_bytes=int(budget)),
    )(features, centers, bias)

    return out.reshape(-1)[:n]


def _check(features, cluster_centers, indices):
    # Reference semantics (cdist + argmin).  Compare by distance margin rather
    # than exact index equality so fp rounding / near-ties cannot flake.
    dists = jnp.sqrt(jnp.sum(
        (features[:, None, :] - cluster_centers[None, :, :]) ** 2, axis=-1))
    d_min = jnp.min(dists, axis=-1)
    d_chosen = jnp.take_along_axis(dists, indices[:, None], axis=-1)[:, 0]
    assert indices.shape == (features.shape[0],)
    assert indices.dtype == jnp.int32
    assert bool(jnp.all(indices >= 0)) and bool(jnp.all(indices < cluster_centers.shape[0]))
    assert bool(jnp.all(d_chosen <= d_min + 1e-3)), "kernel picked a non-minimal cluster"


if __name__ == "__main__":
    key = jax.random.PRNGKey(0)
    k_feat, k_cent, k_feat2 = jax.random.split(key, 3)

    # Small shapes; N deliberately not a multiple of 128 to exercise the
    # partial-block (no-pad) path.  Centers are random stand-ins for a loaded
    # checkpoint (the module zero-inits them, which would make argmin trivial).
    N, D, K = 200, 32, 16
    features = jax.random.normal(k_feat, (N, D), dtype=jnp.float32)
    cluster_centers = jax.random.normal(k_cent, (K, D), dtype=jnp.float32)

    indices = jax.block_until_ready(kmeans_predict(features, cluster_centers))
    _check(features, cluster_centers, indices)

    # Second shape exercises the multi-tile grid with a ragged last block.
    N2 = 2500
    features2 = jax.random.normal(k_feat2, (N2, D), dtype=jnp.float32)
    indices2 = jax.block_until_ready(kmeans_predict(features2, cluster_centers))
    _check(features2, cluster_centers, indices2)

    print("KERNEL_OK")
</pallas_src>

<mosaic_0001>
module attributes {stable_mosaic.version = 11 : i64} {
  func.func @_kmeans_kernel(%arg0: i32, %arg1: memref<256x32xf32, #tpu.memory_space<vmem>>, %arg2: memref<16x32xf32, #tpu.memory_space<vmem>>, %arg3: memref<16x1xf32, #tpu.memory_space<vmem>>, %arg4: memref<2x128xi32, #tpu.memory_space<vmem>>) attributes {dimension_semantics = [#tpu.dimension_semantics<parallel>], iteration_bounds = array<i64: 1>, scalar_prefetch = 0 : i64, scratch_operands = 0 : i64, tpu.core_type = #tpu.core_type<tc>, window_params = [{transform_indices = @transform_0, window_bounds = array<i64: 256, 32>}, {pipeline_mode = #tpu.pipeline_mode<synchronous>, transform_indices = @transform_1, window_bounds = array<i64: 16, 32>}, {pipeline_mode = #tpu.pipeline_mode<synchronous>, transform_indices = @transform_2, window_bounds = array<i64: 16, 1>}, {transform_indices = @transform_3, window_bounds = array<i64: 2, 128>}]} {
    %c0 = arith.constant 0 : index
    %c0_0 = arith.constant 0 : index
    %0 = vector.load %arg2[%c0, %c0_0] : memref<16x32xf32, #tpu.memory_space<vmem>>, vector<16x32xf32>
    %c0_1 = arith.constant 0 : index
    %c0_2 = arith.constant 0 : index
    %1 = vector.load %arg1[%c0_1, %c0_2] : memref<256x32xf32, #tpu.memory_space<vmem>>, vector<256x32xf32>
    %cst = arith.constant dense<0.000000e+00> : vector<16x256xf32>
    %2 = tpu.matmul %0, %1, %cst {dimension_numbers = #tpu.dot_dimension_numbers<[1], [1], [0], [0], [0, 0, 1, 0], [], []>} : vector<16x32xf32>, vector<256x32xf32>, vector<16x256xf32> -> vector<16x256xf32>
    %c0_3 = arith.constant 0 : index
    %c0_4 = arith.constant 0 : index
    %3 = vector.load %arg3[%c0_3, %c0_4] : memref<16x1xf32, #tpu.memory_space<vmem>>, vector<16x1xf32>
    %4 = vector.broadcast %3 : vector<16x1xf32> to vector<16x256xf32>
    %5 = arith.addf %2, %4 : vector<16x256xf32>
    %6 = tpu.bitcast %5 : vector<16x256xf32> -> vector<16x256xi32>
    %c31_i32 = arith.constant 31 : i32
    %7 = vector.broadcast %c31_i32 : i32 to vector<16x256xi32>
    %8 = arith.shrsi %6, %7 : vector<16x256xi32>
    %c2147483647_i32 = arith.constant 2147483647 : i32
    %9 = vector.broadcast %c2147483647_i32 : i32 to vector<16x256xi32>
    %10 = arith.andi %8, %9 : vector<16x256xi32>
    %11 = arith.xori %6, %10 : vector<16x256xi32>
    %12 = tpu.iota {dimensions = array<i32: 0>} : vector<16x1xi32>
    %c15_i32 = arith.constant 15 : i32
    %13 = vector.broadcast %c15_i32 : i32 to vector<16x1xi32>
    %14 = arith.subi %13, %12 : vector<16x1xi32>
    %c-16_i32 = arith.constant -16 : i32
    %15 = vector.broadcast %c-16_i32 : i32 to vector<16x256xi32>
    %16 = arith.andi %11, %15 : vector<16x256xi32>
    %17 = vector.broadcast %14 : vector<16x1xi32> to vector<16x256xi32>
    %18 = arith.ori %16, %17 : vector<16x256xi32>
    %cst_5 = arith.constant dense<-2147483648> : vector<256xi32>
    %19 = vector.multi_reduction <maxsi>, %18, %cst_5 [0] : vector<16x256xi32> to vector<256xi32>
    %20 = vector.shape_cast %19 : vector<256xi32> to vector<1x256xi32>
    %c15_i32_6 = arith.constant 15 : i32
    %21 = vector.broadcast %c15_i32_6 : i32 to vector<1x256xi32>
    %22 = arith.andi %20, %21 : vector<1x256xi32>
    %c15_i32_7 = arith.constant 15 : i32
    %23 = vector.broadcast %c15_i32_7 : i32 to vector<1x256xi32>
    %24 = arith.subi %23, %22 : vector<1x256xi32>
    %25 = vector.shape_cast %24 : vector<1x256xi32> to vector<2x128xi32>
    %c0_8 = arith.constant 0 : index
    %c0_9 = arith.constant 0 : index
    %26 = vector.load %arg4[%c0_8, %c0_9] : memref<2x128xi32, #tpu.memory_space<vmem>>, vector<2x128xi32>
    tpu.vector_store %arg4[%c0_8, %c0_9], %25 {strides = array<i32>} : memref<2x128xi32, #tpu.memory_space<vmem>>, vector<2x128xi32>,
    return
  }
  func.func @transform_0(%arg0: i32) -> (i32, i32) {
    %c0_i32 = arith.constant 0 : i32
    %c0_i32_0 = arith.constant 0 : i32
    return %arg0, %c0_i32 : i32, i32
  }
  func.func @transform_1(%arg0: i32) -> (i32, i32) {
    %c0_i32 = arith.constant 0 : i32
    %c0_i32_0 = arith.constant 0 : i32
    %c0_i32_1 = arith.constant 0 : i32
    return %c0_i32, %c0_i32_0 : i32, i32
  }
  func.func @transform_2(%arg0: i32) -> (i32, i32) {
    %c0_i32 = arith.constant 0 : i32
    %c0_i32_0 = arith.constant 0 : i32
    %c0_i32_1 = arith.constant 0 : i32
    return %c0_i32, %c0_i32_0 : i32, i32
  }
  func.func @transform_3(%arg0: i32) -> (i32, i32) {
    %c0_i32 = arith.constant 0 : i32
    %c0_i32_0 = arith.constant 0 : i32
    return %arg0, %c0_i32 : i32, i32
  }
}

</mosaic_0001>

<bundles_post_ra>
// kernel: tpu_custom_call.1
= control target key start
LH: loop header
LB: loop body
LE: loop exit
PB: predicated region body
PF: predicated region fallthrough
CT: control target
= control target key end

     0   :  { %vm61_vm0 = vcmask 261120   ;;  %s582_s0 = inlined_call_operand.vmem [shape: f32[200,32], index: 0, kind: input, shape index: {}]   ;;  %s583_s1 = inlined_call_operand.vmem [shape: f32[16,32], index: 1, kind: input, shape index: {}]   ;;  %s584_s2 = inlined_call_operand.vmem [shape: f32[16,1], index: 2, kind: input, shape index: {}]   ;;  %s585_s3 = inlined_call_operand.hbm [shape: s32[2,128], index: 3, kind: output, shape index: {}]  }
   0x1   :  { %v32_v0 = vld [vmem:[%s582_s0 + $0x78] sm:$0xff]  ;;  %v31_v2 = vld [vmem:[%s582_s0 + $0x70] sm:$0xff]  ;;  %v30_v4 = vld [vmem:[%s582_s0 + $0x68] sm:$0xff] }
   0x2   :  { %v48_v1 = vld [vmem:[%s582_s0 + $0xf8] sm:$0xff]  ;;  %284 = vmatpush.xpose.msk.msra.mxu0 %vm61_vm0, %v32_v0  ;;  %320 = vmatpush.xpose.msk.msra.mxu2 %vm61_vm0, %v32_v0  ;;  %v47_v3 = vld [vmem:[%s582_s0 + $0xf0] sm:$0xff]  ;;  %v46_v5 = vld [vmem:[%s582_s0 + $0xe8] sm:$0xff] }
   0x3   :  { %302 = vmatpush.xpose.msk.msra.mxu1 %vm61_vm0, %v48_v1  ;;  %336 = vmatpush.xpose.msk.msra.mxu3 %vm61_vm0, %v48_v1 }
   0x6   :  { %285 = vmatpush.xpose.msk.msra.mxu0 %vm61_vm0, %v31_v2  ;;  %321 = vmatpush.xpose.msk.msra.mxu2 %vm61_vm0, %v31_v2 }
   0x7   :  { %303 = vmatpush.xpose.msk.msra.mxu1 %vm61_vm0, %v47_v3  ;;  %337 = vmatpush.xpose.msk.msra.mxu3 %vm61_vm0, %v47_v3 }
   0x8   :  { %8 = vsyncpa [#allocation3], 0  ;;  %v29_v6 = vld [vmem:[%s582_s0 + $0x60] sm:$0xff]  ;;  %v28_v8 = vld [vmem:[%s582_s0 + $0x58] sm:$0xff]  ;;  %v381_v18 = vmov 0   ;;  %v226_v43 = vlaneseq  ;;  %s275_s4 = sshll.u32 %s585_s3, 4  ;;  %s276_s4 = int_to_ptr.hbm [resolvable:$true] %s275_s4 }
   0x9   :  { %v45_v7 = vld [vmem:[%s582_s0 + $0xe0] sm:$0xff]  ;;  %v44_v9 = vld [vmem:[%s582_s0 + $0xd8] sm:$0xff]  ;;  %v27_v10 = vld [vmem:[%s582_s0 + $0x50] sm:$0xff]  ;;  %354 = vset.pattern.permute.xlu0 %v381_v18 }
   0xa   :  { %286 = vmatpush.xpose.msk.msra.mxu0 %vm61_vm0, %v30_v4  ;;  %322 = vmatpush.xpose.msk.msra.mxu2 %vm61_vm0, %v30_v4  ;;  %v43_v11 = vld [vmem:[%s582_s0 + $0xd0] sm:$0xff]  ;;  %v26_v12 = vld [vmem:[%s582_s0 + $0x48] sm:$0xff]  ;;  %v25_v14 = vld [vmem:[%s582_s0 + $0x40] sm:$0xff]  ;;  %v227_v49 = vshrl.u32 %v226_v43, 7 }
   0xb   :  { %304 = vmatpush.xpose.msk.msra.mxu1 %vm61_vm0, %v46_v5  ;;  %338 = vmatpush.xpose.msk.msra.mxu3 %vm61_vm0, %v46_v5  ;;  %v42_v13 = vld [vmem:[%s582_s0 + $0xc8] sm:$0xff]  ;;  %v41_v15 = vld [vmem:[%s582_s0 + $0xc0] sm:$0xff]  ;;  %v24_v16 = vld [vmem:[%s582_s0 + $0x38] sm:$0xff] }
   0xc   :  { %v40_v17 = vld [vmem:[%s582_s0 + $0xb8] sm:$0xff]  ;;  %v49_v19 = vld [vmem:[%s584_s2] sm:$0xff]  ;;  %v23_v20 = vld [vmem:[%s582_s0 + $0x30] sm:$0xff]  ;;  %v228_v55 = vadd.s32 8, %v227_v49  ;;  %v229_v60 = vsub.s32 15, %v227_v49 }
   0xd   :  { %v39_v21 = vld [vmem:[%s582_s0 + $0xb0] sm:$0xff]  ;;  %53 = vperm.xlu0 %354, %v49_v19   ;;  %v22_v22 = vld [vmem:[%s582_s0 + $0x28] sm:$0xff]  ;;  %v21_v25 = vld [vmem:[%s582_s0 + $0x20] sm:$0xff] }
   0xe   :  { %287 = vmatpush.xpose.msk.msra.mxu0 %vm61_vm0, %v29_v6  ;;  %323 = vmatpush.xpose.msk.msra.mxu2 %vm61_vm0, %v29_v6  ;;  %v38_v23 = vld [vmem:[%s582_s0 + $0xa8] sm:$0xff]  ;;  %v37_v26 = vld [vmem:[%s582_s0 + $0xa0] sm:$0xff]  ;;  %v20_v27 = vld [vmem:[%s582_s0 + $0x18] sm:$0xff]  ;;  %v230_v63 = vsub.s32 15, %v228_v55 }
   0xf   :  { %305 = vmatpush.xpose.msk.msra.mxu1 %vm61_vm0, %v45_v7  ;;  %339 = vmatpush.xpose.msk.msra.mxu3 %vm61_vm0, %v45_v7  ;;  %v50_v24 = vld [vmem:[%s584_s2 + $0x8] sm:$0xff]  ;;  %v36_v28 = vld [vmem:[%s582_s0 + $0x98] sm:$0xff]  ;;  %v19_v29 = vld [vmem:[%s582_s0 + $0x10] sm:$0xff] }
  0x10   :  { %v35_v30 = vld [vmem:[%s582_s0 + $0x90] sm:$0xff]  ;;  %v18_v31 = vld [vmem:[%s582_s0 + $0x8] sm:$0xff]  ;;  %v17_v33 = vld [vmem:[%s582_s0] sm:$0xff] }
  0x11   :  { %v34_v32 = vld [vmem:[%s582_s0 + $0x88] sm:$0xff]  ;;  %v33_v34 = vld [vmem:[%s582_s0 + $0x80] sm:$0xff]  ;;  %s382_s0 = smov [#allocation2]  }
  0x12   :  { %288 = vmatpush.xpose.msk.msra.mxu0 %vm61_vm0, %v28_v8  ;;  %324 = vmatpush.xpose.msk.msra.mxu2 %vm61_vm0, %v28_v8  ;;  %v15_v35 = vld [vmem:[%s583_s1] sm:$0xff]  ;;  %v16_v36 = vld [vmem:[%s583_s1 + $0x8] sm:$0xff]  ;;  %s273_s1 = sshll.u32 %s382_s0, 4  ;;  %s274_s1 = int_to_ptr.vmem [resolvable:$true] %s273_s1 }
  0x13   :  { %306 = vmatpush.xpose.msk.msra.mxu1 %vm61_vm0, %v44_v9  ;;  %340 = vmatpush.xpose.msk.msra.mxu3 %vm61_vm0, %v44_v9 }
  0x15   :  { %58 = vperm.xlu0 %354, %v50_v24  }
  0x16   :  { %289 = vmatpush.xpose.msk.msra.mxu0 %vm61_vm0, %v27_v10  ;;  %325 = vmatpush.xpose.msk.msra.mxu2 %vm61_vm0, %v27_v10 }
  0x17   :  { %307 = vmatpush.xpose.msk.msra.mxu1 %vm61_vm0, %v43_v11  ;;  %341 = vmatpush.xpose.msk.msra.mxu3 %vm61_vm0, %v43_v11 }
  0x1a   :  { %290 = vmatpush.xpose.msk.msra.mxu0 %vm61_vm0, %v26_v12  ;;  %326 = vmatpush.xpose.msk.msra.mxu2 %vm61_vm0, %v26_v12 }
  0x1b   :  { %308 = vmatpush.xpose.msk.msra.mxu1 %vm61_vm0, %v42_v13  ;;  %342 = vmatpush.xpose.msk.msra.mxu3 %vm61_vm0, %v42_v13 }
  0x1e   :  { %291 = vmatpush.xpose.msk.msra.mxu0 %vm61_vm0, %v25_v14  ;;  %327 = vmatpush.xpose.msk.msra.mxu2 %vm61_vm0, %v25_v14 }
  0x1f   :  { %309 = vmatpush.xpose.msk.msra.mxu1 %vm61_vm0, %v41_v15  ;;  %343 = vmatpush.xpose.msk.msra.mxu3 %vm61_vm0, %v41_v15 }
  0x22   :  { %292 = vmatpush.xpose.msk.msra.mxu0 %vm61_vm0, %v24_v16  ;;  %328 = vmatpush.xpose.msk.msra.mxu2 %vm61_vm0, %v24_v16 }
  0x23   :  { %310 = vmatpush.xpose.msk.msra.mxu1 %vm61_vm0, %v40_v17  ;;  %344 = vmatpush.xpose.msk.msra.mxu3 %vm61_vm0, %v40_v17 }
  0x26   :  { %293 = vmatpush.xpose.msk.msra.mxu0 %vm61_vm0, %v23_v20  ;;  %329 = vmatpush.xpose.msk.msra.mxu2 %vm61_vm0, %v23_v20 }
  0x27   :  { %311 = vmatpush.xpose.msk.msra.mxu1 %vm61_vm0, %v39_v21  ;;  %345 = vmatpush.xpose.msk.msra.mxu3 %vm61_vm0, %v39_v21 }
  0x2a   :  { %294 = vmatpush.xpose.msk.msra.mxu0 %vm61_vm0, %v22_v22  ;;  %330 = vmatpush.xpose.msk.msra.mxu2 %vm61_vm0, %v22_v22 }
  0x2b   :  { %312 = vmatpush.xpose.msk.msra.mxu1 %vm61_vm0, %v38_v23  ;;  %346 = vmatpush.xpose.msk.msra.mxu3 %vm61_vm0, %v38_v23 }
  0x2e   :  { %295 = vmatpush.xpose.msk.msra.mxu0 %vm61_vm0, %v21_v25  ;;  %331 = vmatpush.xpose.msk.msra.mxu2 %vm61_vm0, %v21_v25 }
  0x2f   :  { %313 = vmatpush.xpose.msk.msra.mxu1 %vm61_vm0, %v37_v26  ;;  %347 = vmatpush.xpose.msk.msra.mxu3 %vm61_vm0, %v37_v26 }
  0x32   :  { %296 = vmatpush.xpose.msk.msra.mxu0 %vm61_vm0, %v20_v27  ;;  %332 = vmatpush.xpose.msk.msra.mxu2 %vm61_vm0, %v20_v27 }
  0x33   :  { %314 = vmatpush.xpose.msk.msra.mxu1 %vm61_vm0, %v36_v28  ;;  %348 = vmatpush.xpose.msk.msra.mxu3 %vm61_vm0, %v36_v28 }
  0x36   :  { %297 = vmatpush.xpose.msk.msra.mxu0 %vm61_vm0, %v19_v29  ;;  %333 = vmatpush.xpose.msk.msra.mxu2 %vm61_vm0, %v19_v29 }
  0x37   :  { %315 = vmatpush.xpose.msk.msra.mxu1 %vm61_vm0, %v35_v30  ;;  %349 = vmatpush.xpose.msk.msra.mxu3 %vm61_vm0, %v35_v30 }
  0x3a   :  { %298 = vmatpush.xpose.msk.msra.mxu0 %vm61_vm0, %v18_v31  ;;  %334 = vmatpush.xpose.msk.msra.mxu2 %vm61_vm0, %v18_v31 }
  0x3b   :  { %316 = vmatpush.xpose.msk.msra.mxu1 %vm61_vm0, %v34_v32  ;;  %350 = vmatpush.xpose.msk.msra.mxu3 %vm61_vm0, %v34_v32 }
  0x3e   :  { %299 = vmatpush.xpose.msk.msra.mxu0 %vm61_vm0, %v17_v33  ;;  %335 = vmatpush.xpose.msk.msra.mxu2 %vm61_vm0, %v17_v33 }
  0x3f   :  { %317 = vmatpush.xpose.msk.msra.mxu1 %vm61_vm0, %v33_v34  ;;  %351 = vmatpush.xpose.msk.msra.mxu3 %vm61_vm0, %v33_v34 }
  0x41   :  { %300 = vmatmul.msk.f32.vlgmr.msra.gmra.mxu0 %vm61_vm0, %v15_v35  ;;  %301 = vmatmul.msk.f32.vlgmr.msra.gmra.mxu2 %vm61_vm0, %v16_v36 }
  0x42   :  { %318 = vmatmul.msk.f32.vlgmr.msra.gmra.mxu1 %vm61_vm0, %v15_v35  ;;  %319 = vmatmul.msk.f32.vlgmr.msra.gmra.mxu3 %vm61_vm0, %v16_v36 }
  0x7f   :  { %v54_v37 = vpop.permute.xlu0 %53 }
  0x87   :  { %v59_v46 = vpop.permute.xlu0 %58 }
  0xbe   :  { %v181_v38 = vpop.f32.mrf.mxu0 }
  0xbf   :  { %v182_v39 = vadd.f32 %v181_v38, %v54_v37  ;;  %v204_v40 = vpop.f32.mrf.mxu1 }
  0xc0   :  { %v205_v41 = vadd.f32 %v204_v40, %v54_v37 }
  0xc1   :  { %v214_v42 = vshra.s32 %v182_v39, 31 }
  0xc2   :  { %v215_v44 = vshra.s32 %v205_v41, 31 }
  0xc3   :  { %v218_v45 = vand.u32 2147483647, %v214_v42 }
  0xc4   :  { %v219_v47 = vand.u32 2147483647, %v215_v44  ;;  %v184_v48 = vpop.f32.mrf.mxu2 }
  0xc5   :  { %v185_v50 = vadd.f32 %v184_v48, %v59_v46  ;;  %v207_v51 = vpop.f32.mrf.mxu3  ;;  %v222_v53 = vxor.u32 %v218_v45, %v182_v39 }
  0xc6   :  { %v208_v52 = vadd.f32 %v207_v51, %v59_v46  ;;  %v223_v56 = vxor.u32 %v219_v47, %v205_v41 }
  0xc7   :  { %v216_v54 = vshra.s32 %v185_v50, 31  ;;  %v231_v61 = vand.u32 4294967280, %v222_v53 }
  0xc8   :  { %v217_v57 = vshra.s32 %v208_v52, 31  ;;  %v232_v0 = vand.u32 4294967280, %v223_v56 }
  0xc9   :  { %v220_v58 = vand.u32 2147483647, %v216_v54  ;;  %v235_v4 = vor.u32 %v231_v61, %v229_v60 }
  0xca   :  { %v221_v59 = vand.u32 2147483647, %v217_v57  ;;  %v236_v6 = vor.u32 %v232_v0, %v229_v60 }
  0xcb   :  { %v224_v62 = vxor.u32 %v220_v58, %v185_v50 }
  0xcc   :  { %v225_v1 = vxor.u32 %v221_v59, %v208_v52 }
  0xcd   :  { %v233_v2 = vand.u32 4294967280, %v224_v62 }
  0xce   :  { %v234_v3 = vand.u32 4294967280, %v225_v1 }
  0xcf   :  { %v237_v5 = vor.u32 %v233_v2, %v230_v63 }
  0xd0   :  { %v238_v7 = vor.u32 %v234_v3, %v230_v63 }
  0xd1   :  { %vm239_vm1 = vcmp.gt.s32.totalorder %v235_v4, %v237_v5 }
  0xd2   :  { %v240_v8 = vsel %vm239_vm1, %v235_v4, %v237_v5  ;;  %vm250_vm2 = vcmp.gt.s32.totalorder %v236_v6, %v238_v7 }
  0xd3   :  { %v241_v9 = vrot.slane %v240_v8, 4  ;;  %v251_v10 = vsel %vm250_vm2, %v236_v6, %v238_v7 }
  0xd4   :  { %v252_v11 = vrot.slane %v251_v10, 4 }
  0xd5   :  { %vm242_vm3 = vcmp.gt.s32.totalorder %v240_v8, %v241_v9 }
  0xd6   :  { %vm253_vm4 = vcmp.gt.s32.totalorder %v251_v10, %v252_v11  ;;  %v243_v12 = vsel %vm242_vm3, %v240_v8, %v241_v9 }
  0xd7   :  { %v244_v13 = vrot.slane %v243_v12, 2  ;;  %v254_v14 = vsel %vm253_vm4, %v251_v10, %v252_v11 }
  0xd8   :  { %v255_v15 = vrot.slane %v254_v14, 2 }
  0xd9   :  { %vm245_vm5 = vcmp.gt.s32.totalorder %v243_v12, %v244_v13 }
  0xda   :  { %v246_v16 = vsel %vm245_vm5, %v243_v12, %v244_v13  ;;  %vm256_vm6 = vcmp.gt.s32.totalorder %v254_v14, %v255_v15 }
  0xdb   :  { %v247_v17 = vrot.slane %v246_v16, 1  ;;  %v257_v18 = vsel %vm256_vm6, %v254_v14, %v255_v15 }
  0xdc   :  { %v258_v19 = vrot.slane %v257_v18, 1 }
  0xdd   :  { %vm248_vm7 = vcmp.gt.s32.totalorder %v246_v16, %v247_v17 }
  0xde   :  { %v249_v20 = vsel %vm248_vm7, %v246_v16, %v247_v17  ;;  %vm259_vm8 = vcmp.gt.s32.totalorder %v257_v18, %v258_v19 }
  0xdf   :  { %v260_v21 = vsel %vm259_vm8, %v257_v18, %v258_v19  ;;  %v261_v22 = vand.u32 15, %v249_v20 }
  0xe0   :  { %v262_v23 = vand.u32 15, %v260_v21 }
  0xe1   :  { %v263_v24 = vsub.s32 15, %v261_v22 }
  0xe2   :  { %v264_v25 = vsub.s32 15, %v262_v23 }
  0xe3   :  { %265 = vst [vmem:[#allocation2] ss:$2 sm:$0x1] %v263_v24 }
  0xe4   :  { %267 = vst [vmem:[#allocation2 + $0x1] ss:$2 sm:$0x1] %v264_v25 }
  0xe5   :  { %278 = dma.vmem_to_hbm [thread:$0]  %s274_s1, 32, %s276_s4, [#allocation3]  }
  0xe6   :  { %379 = dma.done.wait [#allocation3], 32  }
  0xe7   :  { %380 = vsyncadd [#allocation3], 4294967264 }
  0xe8   :  { %283 = vsyncpa [#allocation3], 1 }

</bundles_post_ra>
